<compile_context>
chip_gen: v7x
topology: tpu7x:2x2x1
jax: 0.10.0
libtpu: 0.0.40
codegen_flags: <defaults>
</compile_context>

<pallas_src>
from functools import partial

import jax
import jax.numpy as jnp
from jax import lax
from jax.experimental import pallas as pl
from jax.experimental.pallas import tpu as pltpu


# --------------------------------------------------------------------------- #
# In-kernel helpers
# --------------------------------------------------------------------------- #
def _hash_u32(x):
    """lowbias32 integer mixer: pure 32-bit VPU ops (mul/xor/shift), so it
    lowers both through Mosaic and in interpret mode (no pltpu.prng_*)."""
    x = (x ^ (x >> 16)) * jnp.uint32(0x7FEB352D)
    x = (x ^ (x >> 15)) * jnp.uint32(0x846CA68B)
    return x ^ (x >> 16)


def _keep_mask(shape, seed, drop_p):
    """Counter-based dropout keep-mask.  Per-tile streams are decorrelated by
    hashing (seed, tile_id) mixed with large odd constants; the per-element
    decision is an integer-threshold compare on the top 23 random bits."""
    tile = pl.program_id(0) * pl.num_programs(1) + pl.program_id(1)
    base = _hash_u32(jnp.uint32(seed) * jnp.uint32(0x9E3779B1)
                     + tile.astype(jnp.uint32) * jnp.uint32(0x85EBCA77))
    r = lax.broadcasted_iota(jnp.int32, shape, 0)
    c = lax.broadcasted_iota(jnp.int32, shape, 1)
    bits = _hash_u32((r * shape[1] + c).astype(jnp.uint32) ^ base)
    thresh = jnp.uint32(int(round(float(drop_p) * (1 << 23))))
    return (bits >> 9) >= thresh


def _masked_halos(top_ref, bot_ref):
    """Halo rows are read from the un-duplicated input via clamped index maps;
    zero them at the image borders (they are the conv zero-pad rows there)."""
    t = pl.program_id(1)
    top = top_ref[...]
    bot = bot_ref[...]
    top = jnp.where(t > 0, top, jnp.zeros_like(top))
    bot = jnp.where(t < pl.num_programs(1) - 1, bot, jnp.zeros_like(bot))
    return top, bot


def _conv_rows_tile(body, top, bot, w2, *, tr_o, up_w, cin):
    """3x3 conv over one tile of 2*tr_o upsampled output rows.

    body: (tr_o, up_w+2, cin)  original-height rows (width already 2x + padded)
    top/bot: (1, up_w+2, cin)  halo rows above / below (already zero-masked)
    w2:  (9*cin, cout)         im2col weights, row = (dy*3 + dx)*cin + ci
    returns (2*tr_o*up_w, cout) float32, row-major over (out_row, out_col).
    """
    tr = 2 * tr_o
    # 2x nearest row-upsample in-kernel: leading-dim broadcast + reshape only
    # (layout-free).  Halo rows stay single (conv pad / tile-overlap rows).
    mid2 = jnp.broadcast_to(body[:, None], (tr_o, 2, up_w + 2, cin))
    mid2 = mid2.reshape(tr, up_w + 2, cin)
    up = jnp.concatenate([top, mid2, bot], axis=0)           # (tr+2, up_w+2, cin)
    # im2col: 9 shifted views -> ONE MXU GEMM with contraction depth K = 9*cin.
    taps = [up[dy:dy + tr, dx:dx + up_w, :] for dy in range(3) for dx in range(3)]
    patches = jnp.concatenate(taps, axis=-1).reshape(tr * up_w, 9 * cin)
    return jnp.dot(patches, w2, preferred_element_type=jnp.float32)


def _conv_and_stats(body_ref, top_ref, bot_ref, w2_ref, *, tr_o, up_w, cin):
    top, bot = _masked_halos(top_ref, bot_ref)
    y = _conv_rows_tile(body_ref[...], top, bot, w2_ref[...],
                        tr_o=tr_o, up_w=up_w, cin=cin)
    mean_t = jnp.mean(y, axis=0, keepdims=True)
    m2_t = jnp.sum((y - mean_t) ** 2, axis=0, keepdims=True)
    return y, jnp.concatenate([mean_t, m2_t], axis=0)        # (2, cout)


def _epilogue(y, scale, shift, *, apply_relu, drop_p, seed):
    y = y * scale + shift
    if apply_relu:
        y = jnp.maximum(y, 0.0)
    if drop_p > 0.0:
        # 1/(1-p) is already folded into scale/shift; only the mask remains.
        y = jnp.where(_keep_mask(y.shape, seed, drop_p), y, 0.0)
    return y


# --------------------------------------------------------------------------- #
# Kernels
# --------------------------------------------------------------------------- #
def _stats_kernel(body_ref, top_ref, bot_ref, w2_ref, stat_ref,
                  *, tr_o, up_w, cin):
    """Pass 1 (recompute variant): per-tile (mean, centered M2) of the conv
    output.  Conv bias is excluded; it cancels inside BatchNorm."""
    _, stats = _conv_and_stats(body_ref, top_ref, bot_ref, w2_ref,
                               tr_o=tr_o, up_w=up_w, cin=cin)
    stat_ref[...] = stats


def _stats_cache_kernel(body_ref, top_ref, bot_ref, w2_ref, stat_ref, yc_ref,
                        *, tr_o, up_w, cin):
    """Pass 1 (cache variant, v7x-friendly): also writes the conv tile so pass
    2 is purely element-wise (no duplicated upsample/im2col/GEMM work)."""
    y, stats = _conv_and_stats(body_ref, top_ref, bot_ref, w2_ref,
                               tr_o=tr_o, up_w=up_w, cin=cin)
    stat_ref[...] = stats
    # (cout, rows): lane-dense store (rows is a multiple of 128), NCHW-native.
    yc_ref[...] = y.T.astype(yc_ref.dtype)


def _finalize_conv_kernel(body_ref, top_ref, bot_ref, w2_ref, scale_ref,
                          shift_ref, o_ref, *, tr_o, up_w, cin,
                          apply_relu, drop_p, seed):
    """Pass 2 (recompute variant): conv tile -> fused bias/BN/dropout-scale
    -> ReLU -> dropout mask -> transposed lane-dense store (NCHW-native)."""
    top, bot = _masked_halos(top_ref, bot_ref)
    y = _conv_rows_tile(body_ref[...], top, bot, w2_ref[...],
                        tr_o=tr_o, up_w=up_w, cin=cin)       # (rows, cout)
    y = _epilogue(y, scale_ref[...], shift_ref[...],
                  apply_relu=apply_relu, drop_p=drop_p, seed=seed)
    o_ref[...] = y.T.astype(o_ref.dtype)                     # (cout, rows)


def _finalize_cached_kernel(yc_ref, scale_ref, shift_ref, o_ref,
                            *, apply_relu, drop_p, seed):
    """Pass 2 (cache variant): purely element-wise epilogue over the cached
    conv tile, already stored as (cout, rows)."""
    y = yc_ref[...].astype(jnp.float32)
    y = _epilogue(y, scale_ref[...], shift_ref[...],
                  apply_relu=apply_relu, drop_p=drop_p, seed=seed)
    o_ref[...] = y.astype(o_ref.dtype)


# --------------------------------------------------------------------------- #
# Tiling
# --------------------------------------------------------------------------- #
def _pick_tile_rows(H, W, cin, cout, n_batch, in_bytes, out_bytes, cache_bytes,
                    budget_bytes=28 << 20, min_grid_steps=4):
    """Upsampled output rows per grid step.

    Honest per-step VMEM estimate: double-buffered input / halo / weight /
    output (and optional conv-cache) blocks plus the in-kernel `up`, `patches`
    and f32-result intermediates.  The default budget leaves headroom on every
    generation (v7x: 64 MiB physical per TC).  Prefers tiles whose packed
    output row (TR*W) is a multiple of 128 (lane-dense stores) and keeps at
    least `min_grid_steps` grid steps so both v7x TensorCores get work.
    """
    cands = [d for d in range(2, H + 1, 2) if H % d == 0]

    def est(tr):
        tro = tr // 2
        body = tro * (W + 2) * cin * in_bytes
        halo = 2 * (W + 2) * cin * in_bytes
        wts = 9 * cin * cout * in_bytes
        outb = tr * W * cout * out_bytes
        cacheb = tr * W * cout * cache_bytes
        interm = ((tr + 2) * (W + 2) * cin * in_bytes     # `up`
                  + tr * W * 9 * cin * in_bytes           # `patches`
                  + 2 * tr * W * cout * 4)                # f32 result (+ transpose)
        return 2 * (body + halo + wts + outb + cacheb) + interm

    fit = [d for d in cands if est(d) <= budget_bytes] or cands[:1]
    dense = [d for d in fit if (d * W) % 128 == 0 or d == H] or fit
    multi = [d for d in dense if n_batch * (H // d) >= min_grid_steps] or dense
    return max(multi)


# --------------------------------------------------------------------------- #
# Wrapper
# --------------------------------------------------------------------------- #
def upblock_forward(x_nchw, conv_w, conv_b, gamma, beta, *,
                    first_layer=False, last_layer=False,
                    drop_p=0.2, eps=1e-5, dropout_seed=0,
                    use_bf16_matmul=False, recompute_conv=True,
                    out_dtype=jnp.float32):
    """UpBlock forward.  x_nchw: (N, Cin, h, w) PyTorch NCHW; returns NCHW.

    use_bf16_matmul: bf16 MXU operands with f32 accumulate (recommended on all
                     generations; element-wise math stays f32 in-kernel).
    recompute_conv : True  -> pass 2 recomputes the conv (v5e/v6e default);
                     False -> pass 1 caches the conv tile and pass 2 is a pure
                              element-wise epilogue (recommended on v7x).
    """
    N, Cin, h, w = x_nchw.shape
    Cout = conv_w.shape[0]                      # torch layout (Cout, Cin, 3, 3)
    H, W = 2 * h, 2 * w
    midblock = not (first_layer or last_layer)
    if not midblock:                            # module only drops out mid-block
        drop_p = 0.0
    drop_p = float(drop_p)
    seed = int(dropout_seed)

    mxu_dtype = jnp.bfloat16 if use_bf16_matmul else jnp.float32
    cache_conv = midblock and not recompute_conv
    cache_dtype = mxu_dtype
    in_b = jnp.dtype(mxu_dtype).itemsize
    out_b = jnp.dtype(out_dtype).itemsize
    cache_b = jnp.dtype(cache_dtype).itemsize if cache_conv else 0

    TR = _pick_tile_rows(H, W, Cin, Cout, N, in_b, out_b, cache_b)
    TRo = TR // 2
    n_tiles = H // TR

    # ---- wrapper prep: cast to the MXU dtype FIRST, then 2x width upsample +
    # width zero-pad at the ORIGINAL height.  No row-halo gather copy: the
    # kernels read the overlapping halo rows straight out of `xw` via two
    # extra 1-row BlockSpecs with clamped index maps; the 2x row upsample
    # happens in-kernel.
    x_nhwc = jnp.transpose(x_nchw, (0, 2, 3, 1)).astype(mxu_dtype)
    xw = jnp.pad(jnp.repeat(x_nhwc, 2, axis=2),
                 ((0, 0), (0, 0), (1, 1), (0, 0)))           # (N, h, W+2, Cin)

    # torch (Cout, Cin, 3, 3) -> im2col (9*Cin, Cout), row = (dy*3+dx)*Cin + ci
    w2 = jnp.transpose(conv_w, (2, 3, 1, 0)).reshape(9 * Cin, Cout)
    w2 = w2.astype(mxu_dtype)

    grid = (N, n_tiles)
    body_spec = pl.BlockSpec((None, TRo, W + 2, Cin), lambda n, t: (n, t, 0, 0))
    top_spec = pl.BlockSpec((None, 1, W + 2, Cin),
                            lambda n, t: (n, jnp.maximum(t * TRo - 1, 0), 0, 0))
    bot_spec = pl.BlockSpec((None, 1, W + 2, Cin),
                            lambda n, t: (n, jnp.minimum((t + 1) * TRo, h - 1), 0, 0))
    w_spec = pl.BlockSpec((9 * Cin, Cout), lambda n, t: (0, 0))
    # Output is stored (Cout, TR*W) per tile into an (N, Cout, H*W) array:
    # lane-dense stores (TR*W multiple of 128) at no extra HBM bytes, and the
    # result is already NCHW, so no wrapper-side transpose is needed.
    out_spec = pl.BlockSpec((None, Cout, TR * W), lambda n, t: (n, 0, t))
    cparams = pltpu.CompilerParams(
        dimension_semantics=("parallel", "parallel"),
        vmem_limit_bytes=48 << 20)              # < 64 MiB physical on v7x

    apply_relu = midblock or bool(first_layer)
    y_cache = None

    if midblock:
        stats_struct = jax.ShapeDtypeStruct((N, n_tiles, 2, Cout), jnp.float32)
        stats_spec = pl.BlockSpec((None, None, 2, Cout), lambda n, t: (n, t, 0, 0))
        if cache_conv:
            stats, y_cache = pl.pallas_call(
                partial(_stats_cache_kernel, tr_o=TRo, up_w=W, cin=Cin),
                out_shape=(stats_struct,
                           jax.ShapeDtypeStruct((N, Cout, H * W), cache_dtype)),
                grid=grid,
                in_specs=[body_spec, top_spec, bot_spec, w_spec],
                out_specs=(stats_spec, out_spec),
                compiler_params=cparams,
            )(xw, xw, xw, w2)
        else:
            stats = pl.pallas_call(
                partial(_stats_kernel, tr_o=TRo, up_w=W, cin=Cin),
                out_shape=stats_struct,
                grid=grid,
                in_specs=[body_spec, top_spec, bot_spec, w_spec],
                out_specs=stats_spec,
                compiler_params=cparams,
            )(xw, xw, xw, w2)

        # Chan/Welford combine of equal-count per-tile partials (O(Cout) glue).
        means = stats[:, :, 0, :].reshape(-1, Cout)
        m2s = stats[:, :, 1, :].reshape(-1, Cout)
        n_groups, cnt_tile = means.shape[0], TR * W
        mean_c = jnp.mean(means, axis=0)
        var_c = (jnp.sum(m2s, axis=0)
                 + cnt_tile * jnp.sum((means - mean_c) ** 2, axis=0)
                 ) / (n_groups * cnt_tile)                  # biased (BN training)
        inv_std = lax.rsqrt(var_c + eps)
        scale = gamma.astype(jnp.float32) * inv_std
        shift = beta.astype(jnp.float32) - mean_c * scale   # conv bias cancels
        if drop_p > 0.0:                      # fold inverted-dropout 1/(1-p);
            scale = scale / (1.0 - drop_p)    # legal before ReLU (positive scale)
            shift = shift / (1.0 - drop_p)
    else:
        # first_layer: ReLU(conv + b); last_layer: conv + b (no BN / dropout)
        scale = jnp.ones((Cout,), jnp.float32)
        shift = conv_b.astype(jnp.float32)

    out_struct = jax.ShapeDtypeStruct((N, Cout, H * W), out_dtype)
    if y_cache is None:
        out_pix = pl.pallas_call(
            partial(_finalize_conv_kernel, tr_o=TRo, up_w=W, cin=Cin,
                    apply_relu=apply_relu, drop_p=drop_p, seed=seed),
            out_shape=out_struct,
            grid=grid,
            in_specs=[body_spec, top_spec, bot_spec, w_spec,
                      pl.BlockSpec((1, Cout), lambda n, t: (0, 0)),   # scale
                      pl.BlockSpec((1, Cout), lambda n, t: (0, 0))],  # shift
            out_specs=out_spec,
            compiler_params=cparams,
        )(xw, xw, xw, w2, scale.reshape(1, Cout), shift.reshape(1, Cout))
    else:
        out_pix = pl.pallas_call(
            partial(_finalize_cached_kernel, apply_relu=apply_relu,
                    drop_p=drop_p, seed=seed),
            out_shape=out_struct,
            grid=grid,
            in_specs=[out_spec,                                        # conv cache
                      pl.BlockSpec((Cout, 1), lambda n, t: (0, 0)),    # scale
                      pl.BlockSpec((Cout, 1), lambda n, t: (0, 0))],   # shift
            out_specs=out_spec,
            compiler_params=cparams,
        )(y_cache, scale.reshape(Cout, 1), shift.reshape(Cout, 1))

    # (N, Cout, H*W) -> (N, Cout, H, W): a metadata reshape, no HBM transpose.
    return out_pix.reshape(N, Cout, H, W)


# --------------------------------------------------------------------------- #
# Pure-JAX reference (no dropout; dropout is checked structurally)
# --------------------------------------------------------------------------- #
def reference_forward(x_nchw, conv_w, conv_b, gamma, beta, *, eps=1e-5):
    N, Cin, h, w = x_nchw.shape
    Cout = conv_w.shape[0]
    x_up = jnp.repeat(jnp.repeat(x_nchw.astype(jnp.float32), 2, axis=2), 2, axis=3)
    y = lax.conv_general_dilated(
        x_up, conv_w.astype(jnp.float32), window_strides=(1, 1),
        padding=((1, 1), (1, 1)), dimension_numbers=("NCHW", "OIHW", "NCHW"))
    y = y + conv_b.reshape(1, Cout, 1, 1).astype(jnp.float32)
    mean = y.mean(axis=(0, 2, 3), keepdims=True)
    var = ((y - mean) ** 2).mean(axis=(0, 2, 3), keepdims=True)
    y = (y - mean) * lax.rsqrt(var + eps) * gamma.reshape(1, Cout, 1, 1) \
        + beta.reshape(1, Cout, 1, 1)
    return jnp.maximum(y, 0.0)


if __name__ == "__main__":
    # batch=2, in_channels=4, out_channels=8, spatial 8 -> 16 after upsample.
    N, Cin, Cout, S = 2, 4, 8, 8
    key = jax.random.PRNGKey(0)
    kx, kw, kb, kg, kbe = jax.random.split(key, 5)

    x = jax.random.normal(kx, (N, Cin, S, S), jnp.float32)
    conv_w = jax.random.normal(kw, (Cout, Cin, 3, 3), jnp.float32) * 0.1
    conv_b = jax.random.normal(kb, (Cout,), jnp.float32) * 0.1
    gamma = 1.0 + 0.1 * jax.random.normal(kg, (Cout,), jnp.float32)
    beta = 0.1 * jax.random.normal(kbe, (Cout,), jnp.float32)

    H = W = 2 * S
    ref = reference_forward(x, conv_w, conv_b, gamma, beta)       # no dropout

    # 1) middle block, dropout off, conv-recompute path: strict f32 check.
    out0 = jax.block_until_ready(
        upblock_forward(x, conv_w, conv_b, gamma, beta, drop_p=0.0))
    assert out0.shape == (N, Cout, H, W), out0.shape
    assert jnp.allclose(out0, ref, atol=1e-4, rtol=1e-4), \
        float(jnp.max(jnp.abs(out0 - ref)))

    # 2) middle block, dropout off, cached-conv path (v7x-style): strict check.
    out0c = jax.block_until_ready(
        upblock_forward(x, conv_w, conv_b, gamma, beta,
                        drop_p=0.0, recompute_conv=False))
    assert jnp.allclose(out0c, ref, atol=1e-4, rtol=1e-4), \
        float(jnp.max(jnp.abs(out0c - ref)))

    # 3) middle block with dropout (in-kernel counter-hash PRNG): every element
    #    must be 0 (dropped) or ref/(1-p) (kept), and the keep-rate must be ~0.8.
    p = 0.2
    out1 = jax.block_until_ready(
        upblock_forward(x, conv_w, conv_b, gamma, beta,
                        drop_p=p, dropout_seed=123))
    ref_scaled = ref / (1.0 - p)
    tol = 1e-3 * (1.0 + jnp.abs(ref_scaled))
    is_zero = jnp.abs(out1) <= 1e-5
    is_kept = jnp.abs(out1 - ref_scaled) <= tol
    assert bool(jnp.all(is_zero | is_kept))
    active = ref_scaled > 0.05          # elements where dropped/kept is visible
    keep_rate = jnp.sum(is_kept & active) / jnp.maximum(jnp.sum(active), 1)
    assert 0.7 < float(keep_rate) < 0.9, float(keep_rate)

    # 4) bf16 MXU operands (helps on every generation incl. v5e), loose check.
    out2 = jax.block_until_ready(
        upblock_forward(x, conv_w, conv_b, gamma, beta,
                        drop_p=0.0, use_bf16_matmul=True))
    assert jnp.allclose(out2, ref, atol=5e-2, rtol=5e-2), \
        float(jnp.max(jnp.abs(out2 - ref)))

    print("KERNEL_OK")
</pallas_src>

<mosaic_0001>
module attributes {stable_mosaic.version = 11 : i64} {
  func.func @_stats_kernel(%arg0: i32, %arg1: i32, %arg2: memref<1x4x18x4xf32, #tpu.memory_space<vmem>>, %arg3: memref<1x1x18x4xf32, #tpu.memory_space<vmem>>, %arg4: memref<1x1x18x4xf32, #tpu.memory_space<vmem>>, %arg5: memref<36x8xf32, #tpu.memory_space<vmem>>, %arg6: memref<1x1x2x8xf32, #tpu.memory_space<vmem>>) attributes {dimension_semantics = [#tpu.dimension_semantics<parallel>, #tpu.dimension_semantics<parallel>], iteration_bounds = array<i64: 2, 2>, scalar_prefetch = 0 : i64, scratch_operands = 0 : i64, tpu.core_type = #tpu.core_type<tc>, window_params = [{transform_indices = @transform_0, window_bounds = array<i64: 1, 4, 18, 4>}, {transform_indices = @transform_1, window_bounds = array<i64: 1, 1, 18, 4>}, {transform_indices = @transform_2, window_bounds = array<i64: 1, 1, 18, 4>}, {pipeline_mode = #tpu.pipeline_mode<synchronous>, transform_indices = @transform_3, window_bounds = array<i64: 36, 8>}, {transform_indices = @transform_4, window_bounds = array<i64: 1, 1, 2, 8>}]} {
    %c0 = arith.constant 0 : index
    %c0_0 = arith.constant 0 : index
    %c0_1 = arith.constant 0 : index
    %c0_2 = arith.constant 0 : index
    %0 = vector.load %arg3[%c0, %c0_0, %c0_1, %c0_2] : memref<1x1x18x4xf32, #tpu.memory_space<vmem>>, vector<1x1x18x4xf32>
    %1 = vector.shape_cast %0 : vector<1x1x18x4xf32> to vector<1x18x4xf32>
    %c0_3 = arith.constant 0 : index
    %c0_4 = arith.constant 0 : index
    %c0_5 = arith.constant 0 : index
    %c0_6 = arith.constant 0 : index
    %2 = vector.load %arg4[%c0_3, %c0_4, %c0_5, %c0_6] : memref<1x1x18x4xf32, #tpu.memory_space<vmem>>, vector<1x1x18x4xf32>
    %3 = vector.shape_cast %2 : vector<1x1x18x4xf32> to vector<1x18x4xf32>
    %c0_i32 = arith.constant 0 : i32
    %4 = arith.cmpi sgt, %arg1, %c0_i32 : i32
    %cst = arith.constant 0.000000e+00 : f32
    %5 = vector.broadcast %cst : f32 to vector<1x18x4xf32>
    %6 = arith.select %4, %1, %5 : vector<1x18x4xf32>
    %c1_i32 = arith.constant 1 : i32
    %7 = arith.cmpi slt, %arg1, %c1_i32 : i32
    %cst_7 = arith.constant 0.000000e+00 : f32
    %8 = vector.broadcast %cst_7 : f32 to vector<1x18x4xf32>
    %9 = arith.select %7, %3, %8 : vector<1x18x4xf32>
    %c0_8 = arith.constant 0 : index
    %c0_9 = arith.constant 0 : index
    %c0_10 = arith.constant 0 : index
    %c0_11 = arith.constant 0 : index
    %10 = vector.load %arg2[%c0_8, %c0_9, %c0_10, %c0_11] : memref<1x4x18x4xf32, #tpu.memory_space<vmem>>, vector<1x4x18x4xf32>
    %11 = vector.shape_cast %10 : vector<1x4x18x4xf32> to vector<4x18x4xf32>
    %c0_12 = arith.constant 0 : index
    %c0_13 = arith.constant 0 : index
    %12 = vector.load %arg5[%c0_12, %c0_13] : memref<36x8xf32, #tpu.memory_space<vmem>>, vector<36x8xf32>
    %13 = vector.shape_cast %11 : vector<4x18x4xf32> to vector<4x1x18x4xf32>
    %14 = vector.shape_cast %13 : vector<4x1x18x4xf32> to vector<4x1x18x4xf32>
    %15 = vector.broadcast %14 : vector<4x1x18x4xf32> to vector<4x2x18x4xf32>
    %16 = vector.shape_cast %15 : vector<4x2x18x4xf32> to vector<8x18x4xf32>
    %17 = tpu.concatenate %6, %16, %9 in 0 : vector<1x18x4xf32>, vector<8x18x4xf32>, vector<1x18x4xf32> -> vector<10x18x4xf32>
    %18 = vector.extract_strided_slice %17 {offsets = [0, 0, 0], sizes = [8, 16, 4], strides = [1, 1, 1]} : vector<10x18x4xf32> to vector<8x16x4xf32>
    %19 = vector.extract_strided_slice %17 {offsets = [0, 1, 0], sizes = [8, 16, 4], strides = [1, 1, 1]} : vector<10x18x4xf32> to vector<8x16x4xf32>
    %20 = vector.extract_strided_slice %17 {offsets = [0, 2, 0], sizes = [8, 16, 4], strides = [1, 1, 1]} : vector<10x18x4xf32> to vector<8x16x4xf32>
    %21 = vector.extract_strided_slice %17 {offsets = [1, 0, 0], sizes = [8, 16, 4], strides = [1, 1, 1]} : vector<10x18x4xf32> to vector<8x16x4xf32>
    %22 = vector.extract_strided_slice %17 {offsets = [1, 1, 0], sizes = [8, 16, 4], strides = [1, 1, 1]} : vector<10x18x4xf32> to vector<8x16x4xf32>
    %23 = vector.extract_strided_slice %17 {offsets = [1, 2, 0], sizes = [8, 16, 4], strides = [1, 1, 1]} : vector<10x18x4xf32> to vector<8x16x4xf32>
    %24 = vector.extract_strided_slice %17 {offsets = [2, 0, 0], sizes = [8, 16, 4], strides = [1, 1, 1]} : vector<10x18x4xf32> to vector<8x16x4xf32>
    %25 = vector.extract_strided_slice %17 {offsets = [2, 1, 0], sizes = [8, 16, 4], strides = [1, 1, 1]} : vector<10x18x4xf32> to vector<8x16x4xf32>
    %26 = vector.extract_strided_slice %17 {offsets = [2, 2, 0], sizes = [8, 16, 4], strides = [1, 1, 1]} : vector<10x18x4xf32> to vector<8x16x4xf32>
    %27 = tpu.concatenate %18, %19, %20, %21, %22, %23, %24, %25, %26 in 2 : vector<8x16x4xf32>, vector<8x16x4xf32>, vector<8x16x4xf32>, vector<8x16x4xf32>, vector<8x16x4xf32>, vector<8x16x4xf32>, vector<8x16x4xf32>, vector<8x16x4xf32>, vector<8x16x4xf32> -> vector<8x16x36xf32>
    %28 = vector.shape_cast %27 : vector<8x16x36xf32> to vector<128x36xf32>
    %cst_14 = arith.constant dense<0.000000e+00> : vector<128x8xf32>
    %29 = tpu.matmul %28, %12, %cst_14 {dimension_numbers = #tpu.dot_dimension_numbers<[1], [0], [0], [1], [0, 0, 1, 1], [], []>} : vector<128x36xf32>, vector<36x8xf32>, vector<128x8xf32> -> vector<128x8xf32>
    %cst_15 = arith.constant dense<0.000000e+00> : vector<8xf32>
    %30 = vector.multi_reduction <add>, %29, %cst_15 [0] : vector<128x8xf32> to vector<8xf32>
    %31 = vector.shape_cast %30 : vector<8xf32> to vector<1x8xf32>
    %cst_16 = arith.constant 1.280000e+02 : f32
    %32 = vector.broadcast %cst_16 : f32 to vector<1x8xf32>
    %33 = arith.divf %31, %32 : vector<1x8xf32>
    %34 = vector.broadcast %33 : vector<1x8xf32> to vector<128x8xf32>
    %35 = arith.subf %29, %34 : vector<128x8xf32>
    %36 = arith.mulf %35, %35 : vector<128x8xf32>
    %cst_17 = arith.constant dense<0.000000e+00> : vector<8xf32>
    %37 = vector.multi_reduction <add>, %36, %cst_17 [0] : vector<128x8xf32> to vector<8xf32>
    %38 = vector.shape_cast %37 : vector<8xf32> to vector<1x8xf32>
    %39 = tpu.concatenate %33, %38 in 0 : vector<1x8xf32>, vector<1x8xf32> -> vector<2x8xf32>
    %c0_18 = arith.constant 0 : index
    %c0_19 = arith.constant 0 : index
    %c0_20 = arith.constant 0 : index
    %c0_21 = arith.constant 0 : index
    %40 = vector.load %arg6[%c0_18, %c0_19, %c0_20, %c0_21] : memref<1x1x2x8xf32, #tpu.memory_space<vmem>>, vector<1x1x2x8xf32>
    %41 = vector.shape_cast %40 : vector<1x1x2x8xf32> to vector<2x8xf32>
    %42 = vector.shape_cast %39 : vector<2x8xf32> to vector<1x1x2x8xf32>
    tpu.vector_store %arg6[%c0_18, %c0_19, %c0_20, %c0_21], %42 {strides = array<i32>} : memref<1x1x2x8xf32, #tpu.memory_space<vmem>>, vector<1x1x2x8xf32>,
    return
  }
  func.func @transform_0(%arg0: i32, %arg1: i32) -> (i32, i32, i32, i32) {
    %c0_i32 = arith.constant 0 : i32
    %c0_i32_0 = arith.constant 0 : i32
    %c0_i32_1 = arith.constant 0 : i32
    return %arg0, %arg1, %c0_i32, %c0_i32_0 : i32, i32, i32, i32
  }
  func.func @transform_1(%arg0: i32, %arg1: i32) -> (i32, i32, i32, i32) {
    %c4_i32 = arith.constant 4 : i32
    %0 = arith.muli %arg1, %c4_i32 : i32
    %c1_i32 = arith.constant 1 : i32
    %1 = arith.subi %0, %c1_i32 : i32
    %c0_i32 = arith.constant 0 : i32
    %2 = arith.maxsi %1, %c0_i32 : i32
    %c0_i32_0 = arith.constant 0 : i32
    %c0_i32_1 = arith.constant 0 : i32
    %c0_i32_2 = arith.constant 0 : i32
    return %arg0, %2, %c0_i32_0, %c0_i32_1 : i32, i32, i32, i32
  }
  func.func @transform_2(%arg0: i32, %arg1: i32) -> (i32, i32, i32, i32) {
    %c1_i32 = arith.constant 1 : i32
    %0 = arith.addi %arg1, %c1_i32 : i32
    %c4_i32 = arith.constant 4 : i32
    %1 = arith.muli %0, %c4_i32 : i32
    %c7_i32 = arith.constant 7 : i32
    %2 = arith.minsi %1, %c7_i32 : i32
    %c0_i32 = arith.constant 0 : i32
    %c0_i32_0 = arith.constant 0 : i32
    %c0_i32_1 = arith.constant 0 : i32
    return %arg0, %2, %c0_i32, %c0_i32_0 : i32, i32, i32, i32
  }
  func.func @transform_3(%arg0: i32, %arg1: i32) -> (i32, i32) {
    %c0_i32 = arith.constant 0 : i32
    %c0_i32_0 = arith.constant 0 : i32
    %c0_i32_1 = arith.constant 0 : i32
    return %c0_i32, %c0_i32_0 : i32, i32
  }
  func.func @transform_4(%arg0: i32, %arg1: i32) -> (i32, i32, i32, i32) {
    %c0_i32 = arith.constant 0 : i32
    %c0_i32_0 = arith.constant 0 : i32
    %c0_i32_1 = arith.constant 0 : i32
    return %arg0, %arg1, %c0_i32, %c0_i32_0 : i32, i32, i32, i32
  }
}

</mosaic_0001>

<bundles_post_ra>
// kernel: tpu_custom_call.1
= control target key start
LH: loop header
LB: loop body
LE: loop exit
PB: predicated region body
PF: predicated region fallthrough
CT: control target
= control target key end

     0   :  { %s2275_s0 = inlined_call_operand.vmem [shape: f32[2,8,18,4], index: 0, kind: input, shape index: {}]   ;;  %s2276_s1 = inlined_call_operand.vmem [shape: f32[2,8,18,4], index: 1, kind: input, shape index: {}]   ;;  %s2277_s2 = inlined_call_operand.vmem [shape: f32[2,8,18,4], index: 2, kind: input, shape index: {}]   ;;  %s2278_s3 = inlined_call_operand.vmem [shape: f32[36,8], index: 3, kind: input, shape index: {}]   ;;  %s2279_s4 = inlined_call_operand.hbm [shape: f32[2,2,2,8], index: 4, kind: output, shape index: {}]  }
   0x1   :  { %2286 = sst [smem:[#allocation5_spill]] %s2275_s0 }
   0x2   :  { %2287 = sst [smem:[#allocation6_spill]] %s2276_s1 }
   0x3   :  { %9 = vsyncpa [#allocation3], 0 }
   0x4   :  { %11 = vsyncpa [#allocation3 + $0x1], 0  ;;  %s1616_s15 = smov 0   ;;  %s1618_s16 = smov 0  }
   0x5   :  { %s1620_s17 = smov 0   ;;  %s1622_s18 = smov 0  }
   0x6   :  { %s1624_s19 = smov 0   ;;  %s1626_s20 = smov 0  }
   0x7   :  { %s1628_s21 = smov 0   ;;  %s1630_s22 = smov 0  }
   0x8 LB: > { %s1265_s23 = sadd.s32 4294967295, %s1580_s22   ;;  %s1266_s24 = sadd.s32 4294967294, %s1580_s22   ;;  %s1580_s22 = sphi %s1630_s22, %s17_s22   ;;  %s1576_s21 = sphi %s1628_s21, %s2304_s21   ;;  %s1572_s20 = sphi %s1626_s20, %s2303_s20   ;;  %s1568_s19 = sphi %s1624_s19, %s2302_s19   ;;  %s1564_s18 = sphi %s1622_s18, %s2301_s18   ;;  %s1560_s17 = sphi %s1620_s17, %s2300_s17   ;;  %s1556_s16 = sphi %s1618_s16, %s2299_s16   ;;  %s1552_s15 = sphi %s1616_s15, %s2298_s15  }
   0x9   : > { %s26_s25 = sadd.s32 1, %s1572_s20  ;;  %s29_s26 = sadd.s32 1, %s1576_s21 }
   0xa   : > { %p27_p0 = scmp.ge.s32.totalorder %s26_s25, 2  ;;  %p169_p1 = scmp.ne.s32.totalorder %s1560_s17, %s1556_s16 }
   0xb   : > { %p170_p2 = scmp.eq.s32.totalorder %s1265_s23, 3  ;;  %p175_p5 = scmp.ne.s32.totalorder %s1556_s16, %s1552_s15 }
   0xc   : > { %s2306_s25 = smov (%p27_p0, %s26_s25), 0  ;;  %s2308_s26 = smov (!%p27_p0, %s29_s26), %s1576_s21 }
   0xd   : > { %s155_s27 = ssub.s32 %s1572_s20, %s2306_s25  ;;  %p1667_p3 = por %p170_p2, %p169_p1 }
   0xe   : > { %p31_p4 = scmp.ge.s32.totalorder %s2308_s26, 2  ;;  %p176_p6 = scmp.eq.s32.totalorder %s1266_s24, 3 }
   0xf   : > { %p1275_p7 = scmp.ge.s32.totalorder %s1580_s22, 1  ;;  %p251_p9 = scmp.lt.s32.totalorder %s1580_s22, 5 }
  0x10   : > { %s2310_s26 = smov (%p31_p4, %s2308_s26), 0  ;;  %p1676_p8 = por %p176_p6, %p175_p5 }
  0x11   : > { %s154_s30 = ssub.s32 %s1576_s21, %s2310_s26  ;;  %s159_s5 = sadd.s32 1, %s1560_s17 }
  0x12   : > { %s156_s6 = sor.u32 %s155_s27, %s154_s30  ;;  %p252_p10 = pnand %p1275_p7, %p251_p9 }
  0x13   : > { %p157_p11 = scmp.eq.s32.totalorder %s156_s6, 0  ;;  %s1688_s8 = sshll.u32 (!%p252_p10), %s1564_s18, 2  ;;  %vm405_vm0 = vcmask (!%p252_p10), 1046528   ;;  %vm461_vm1 = vcmask (!%p252_p10), 1045504   ;;  %v385_v41 = vld [vmem:[%s2278_s3] sm:$0xff] (!%p252_p10)  ;;  %v386_v44 = vld [vmem:[%s2278_s3 + $0x8] sm:$0xff] (!%p252_p10) }
  0x14   : > { %255 = sbr.rel (%p252_p10) target bundleno = 593 (0x251), region = 36  ;;  %p309_p12 = scmp.lt.s32.totalorder (!%p252_p10), %s1568_s19, 1  ;;  %v1377_v46 = vpack.c.bf16 (!%p252_p10), %v386_v44, %v385_v41  ;;  %v387_v48 = vld [vmem:[%s2278_s3 + $0x10] sm:$0xff] (!%p252_p10)  ;;  %v388_v49 = vld [vmem:[%s2278_s3 + $0x18] sm:$0xff] (!%p252_p10)  ;;  %v389_v62 = vld [vmem:[%s2278_s3 + $0x20] sm:$0xf] (!%p252_p10) }
  0x15   : > { %s1685_s7 = scalar_select %p157_p11, %s1560_s17, %s159_s5  }
  0x16   : > { %p311_p13 = scmp.lt.s32.totalorder (!%p252_p10), %s1688_s8, 7  ;;  %s1280_s13 = sadd.s32 (!%p252_p10), 4294967295, %s1688_s8  ;;  %1378 = vmatprep.subr.bf16.mxu0 (!%p252_p10), %v1377_v46  ;;  %v1381_v50 = vpack.c.bf16 (!%p252_p10), %v388_v49, %v387_v48  ;;  %1385 = vmatprep.subr.bf16.mxu1 (!%p252_p10), %v1377_v46  ;;  %vm865_vm4 = vcmask (!%p252_p10), 1043456   ;;  %vm692_vm5 = vcmask (!%p252_p10), 31744   ;;  %vm703_vm6 = vcmask (!%p252_p10), 64512  }
  0x17   : > { %p321_p0 = scmp.gt.s32.totalorder (!%p252_p10), %s1280_s13, 0  ;;  %p1281_p1 = scmp.lt.s32.totalorder (!%p252_p10), %s1280_s13, 7  ;;  %1380 = vmatpush3.bf16.msra.mxu0 (!%p252_p10), %v1377_v46  ;;  %1388 = vmatpush3.bf16.msra.mxu1 (!%p252_p10), %v1377_v46  ;;  %vm714_vm7 = vcmask (!%p252_p10), 97280   ;;  %vm731_vm8 = vcmask (!%p252_p10), 130048   ;;  %vm748_vm9 = vcmask (!%p252_p10), 162816   ;;  %vm765_vm10 = vcmask (!%p252_p10), 195584  }
  0x18   : > { %s2290_s0 = sld [smem:[#allocation5_spill]] (!%p252_p10)  ;;  %p359_p2 = scmp.gt.s32.totalorder (!%p252_p10), %s1564_s18, 0  ;;  %1382 = vmatprep.subr.bf16.mxu0 (!%p252_p10), %v1381_v50  ;;  %1386 = vmatprep.subr.bf16.mxu1 (!%p252_p10), %v1381_v50  ;;  %vm782_vm11 = vcmask (!%p252_p10), 228352   ;;  %vm799_vm12 = vcmask (!%p252_p10), 261120   ;;  %vm816_vm13 = vcmask (!%p252_p10), 293888   ;;  %vm1122_vm14 = vcmask (!%p252_p10), 1040384  }
  0x19   : > { %s2282_s6 = smov (!%p252_p10), 12   ;;  %s2293_s1 = sld [smem:[#allocation6_spill]] (!%p252_p10)  ;;  %vm1124_vm15 = vcmask (!%p252_p10), 58368  }
  0x1a   : > { %p366_p4 = scmp.lt.s32.totalorder (!%p252_p10), %s1564_s18, 1  ;;  %s2296_s27 = smov (!%p252_p10), 12  }
  0x1b   : > { %s310_s9 = scalar_select %p309_p12, %s1568_s19, 1  ;;  %1384 = vmatpush3.bf16.msra.mxu0 %v1381_v50  ;;  %1389 = vmatpush3.bf16.msra.mxu1 %v1381_v50 }
  0x1c   : > { %s312_s10 = scalar_select %p311_p13, %s1688_s8, 7  ;;  %1351 = vmatprep.subr.msk.mxu0 %vm865_vm4, %v389_v62  ;;  %1387 = vmatprep.subr.msk.mxu1 %vm865_vm4, %v389_v62 }
  0x1d   : > { %s1694_s11 = smul.u32 24, %s310_s9 }
  0x1e   : > { %s1391_s12 = smul.u32 3, %s312_s10 }
  0x1f   : > { %s322_s5 = scalar_select %p321_p0, %s1280_s13, 0  ;;  %1352 = vmatpush3.msk.msra.mxu0 %vm865_vm4, %v389_v62  ;;  %1390 = vmatpush3.msk.msra.mxu1 %vm865_vm4, %v389_v62 }
  0x20   : > { %s315_s14 = sadd.s32 %s1694_s11, %s1391_s12  ;;  %s1583_s12 = smov 4  }
  0x21   : > { %s1278_s23 = sshll.u32 %s315_s14, 3  ;;  %s2312_s5 = smov (!%p1281_p1, %s322_s5), 7 }
  0x22   : > { %s1701_s30 = scalar_lea.vmem %s2290_s0, %s1278_s23  ;;  %s1393_s10 = smul.u32 3, %s2312_s5 }
  0x23   : > { %v1705_v0 = vld [vmem:[%s1701_s30 + $0x8] sm:$0xff]  ;;  %v1708_v1 = vld [vmem:[%s1701_s30] sm:$0xff]  ;;  %v1711_v2 = vld [vmem:[%s1701_s30 + $0x10] sm:$0x3]  ;;  %s360_s9 = scalar_select %p359_p2, 1, 0 }
  0x24   : > { %519 = vrot.lane.b32.xlu1 %v1705_v0, %s2282_s6  ;;  %517 = vrot.lane.b32.xlu0 %v1708_v1, %s2282_s6  ;;  %v411_v3 = vrot.slane %v1708_v1, 1  ;;  %v412_v4 = vrot.slane %v1705_v0, 1  ;;  %v467_v5 = vrot.slane %v1708_v1, 2  ;;  %v468_v6 = vrot.slane %v1705_v0, 2  ;;  %v1729_v10 = vld [vmem:[%s1701_s30 + $0x38] sm:$0xff]  ;;  %s2280_s14 = smov 16   ;;  %s329_s23 = sadd.s32 %s1393_s10, %s1694_s11 }
  0x25   : > { %v414_v7 = vrot.slane %v1711_v2, 1  ;;  %v361_v9 = vstv %s360_s9  ;;  %s1475_s13 = scalar_select %p359_p2, 255, 0  ;;  %v381_v11 = vld [vmem:[%s1701_s30 + $0x40] sm:$0x3]  ;;  %v422_v15 = vrot.slane %v1729_v10, 1 }
  0x26   : > { %v1726_v8 = vsel %vm405_vm0, %v411_v3, %v412_v4  ;;  %v1741_v12 = vsel %vm461_vm1, %v467_v5, %v468_v6  ;;  %s1286_s24 = sshll.u32 %s329_s23, 3  ;;  %vm1747_vm2 = vcmp.eq.s32.totalorder %v361_v9, 1  ;;  %v478_v16 = vrot.slane %v1729_v10, 2  ;;  %v1757_v19 = vld [vmem:[%s1701_s30 + $0x50] sm:$0xff]  ;;  %v384_v20 = vld [vmem:[%s1701_s30 + $0x58] sm:$0x3] }
  0x27   : > { %v1744_v13 = vsel %vm405_vm0, %v412_v4, %v414_v7  ;;  %s331_s9 = scalar_lea.vmem %s2293_s1, %s1286_s24  ;;  %v424_v17 = vrot.slane %v381_v11, 1  ;;  %v480_v18 = vrot.slane %v381_v11, 2  ;;  %s2284_s10 = smov 20   ;;  %v427_v29 = vrot.slane %v1757_v19, 1  ;;  %v1880_v5 = vld [vmem:[%s1701_s30 + $0x18] sm:$0xff] }
  0x28   : > { %435 = vrot.lane.b32.xlu1 %v1726_v8, %s1583_s12  ;;  %541 = vrot.lane.b32.xlu0 %v1726_v8, %s2280_s14  ;;  %v1764_v21 = vld [vmem:[%s331_s9] sm:%s1475_s13]  ;;  %s1321_s23 = sadd.s32 4, %s1688_s8  ;;  %v429_v30 = vrot.slane %v384_v20, 1  ;;  %v483_v35 = vrot.slane %v1757_v19, 2  ;;  %v485_v37 = vrot.slane %v384_v20, 2  ;;  %v470_v47 = vrot.slane %v1711_v2, 2 }
  0x29   : > { %v462_v22 = vrot.slane %v1764_v21, 2  ;;  %v406_v23 = vrot.slane %v1764_v21, 1  ;;  %v355_v24 = vld [vmem:[%s331_s9 + $0x10] sm:$0x3]  ;;  %v1771_v25 = vsel %vm405_vm0, %v422_v15, %v424_v17  ;;  %v1776_v26 = vsel %vm461_vm1, %v478_v16, %v480_v18  ;;  %v1780_v27 = vld [vmem:[%s331_s9 + $0x8] sm:%s1475_s13]  ;;  %p1785_p5 = scmp.lt.s32.totalorder %s1321_s23, 7 }
  0x2a   : > { %v365_v28 = vsel %vm1747_vm2, %v355_v24, 0.0  ;;  %v463_v31 = vrot.slane %v1780_v27, 2  ;;  %v407_v32 = vrot.slane %v1780_v27, 1  ;;  %s367_s8 = scalar_select %p366_p4, 1, 0  ;;  %v1797_v36 = vsel %vm405_vm0, %v427_v29, %v429_v30 }
  0x2b   : > { %v465_v33 = vrot.slane %v365_v28, 2  ;;  %v409_v34 = vrot.slane %v365_v28, 1  ;;  %s2314_s23 = smov (!%p1785_p5, %s1321_s23), 7  ;;  %s1586_s13 = smov 8   ;;  %v1808_v40 = vsel %vm461_vm1, %v483_v35, %v485_v37  ;;  %v471_v53 = vsel %vm461_vm1, %v468_v6, %v470_v47  ;;  %v1883_v6 = vld [vmem:[%s1701_s30 + $0x20] sm:$0xff] }
  0x2c   : > { %565 = vrot.lane.b32.xlu1 %v1741_v12, %s2284_s10  ;;  %543 = vrot.lane.b32.xlu0 %v1744_v13, %s2280_s14  ;;  %v464_v38 = vsel %vm461_vm1, %v462_v22, %v463_v31  ;;  %v408_v39 = vsel %vm405_vm0, %v406_v23, %v407_v32  ;;  %s2316_s23 = smov (!%p1785_p5, %s2314_s23), 7  ;;  %v368_v45 = vstv %s367_s8  ;;  %v416_v7 = vrot.slane %v1880_v5, 1  ;;  %v378_v11 = vld [vmem:[%s1701_s30 + $0x28] sm:$0x3]  ;;  %s2297_s5 = smov 16  }
  0x2d   : > { %v466_v42 = vsel %vm461_vm1, %v463_v31, %v465_v33  ;;  %v410_v43 = vsel %vm405_vm0, %v407_v32, %v409_v34  ;;  %s1819_s9 = scalar_select %p366_p4, 255, 0  ;;  %vm369_vm3 = vcmp.eq.s32.totalorder %v368_v45, 1  ;;  %v417_v9 = vrot.slane %v1883_v6, 1  ;;  %v1916_v23 = vld [vmem:[%s1701_s30 + $0x30] sm:$0xff] }
  0x2e   : > { %s1394_s10 = smul.u32 3, %s2316_s23  ;;  %v419_v14 = vrot.slane %v378_v11, 1  ;;  %v475_v20 = vrot.slane %v378_v11, 2  ;;  %v421_v24 = vrot.slane %v1916_v23, 1  ;;  %v477_v30 = vrot.slane %v1916_v23, 2 }
  0x30   : > { %487 = vrot.lane.b32.xlu1 %v464_v38, %s1586_s13  ;;  %431 = vrot.lane.b32.xlu0 %v408_v39, %s1583_s12  ;;  %s346_s24 = sadd.s32 %s1394_s10, %s1694_s11  ;;  %s1587_s11 = smov 24   ;;  %v420_v18 = vsel %vm405_vm0, %v417_v9, %v419_v14  ;;  %v423_v28 = vsel %vm405_vm0, %v421_v24, %v422_v15  ;;  %v479_v31 = vsel %vm461_vm1, %v477_v30, %v478_v16  ;;  %v1951_v15 = vld [vmem:[%s1701_s30 + $0x48] sm:$0xff] }
  0x31   : > { %s1291_s6 = sshll.u32 %s346_s24, 3  ;;  %s2295_s10 = smov 20   ;;  %v426_v16 = vrot.slane %v1951_v15, 1  ;;  %v482_v32 = vrot.slane %v1951_v15, 2 }
  0x32   : > { %s348_s8 = scalar_lea.vmem %s2277_s2, %s1291_s6  ;;  %s1589_s24 = smov 32  }
  0x33   : > { %v358_v51 = vld [vmem:[%s348_s8 + $0x10] sm:$0x3]  ;;  %v1838_v52 = vld [vmem:[%s348_s8 + $0x8] sm:%s1819_s9]  ;;  %s305_s30 = sand.u32 1, %s1556_s16  }
  0x34   : > { %489 = vrot.lane.b32.xlu1 %v466_v42, %s1586_s13  ;;  %433 = vrot.lane.b32.xlu0 %v410_v43, %s1583_s12  ;;  %v372_v54 = vsel %vm369_vm3, %v358_v51, 0.0  ;;  %v623_v55 = vrot.slane %v1838_v52, 1  ;;  %v658_v56 = vrot.slane %v1838_v52, 2  ;;  %v1850_v57 = vld [vmem:[%s348_s8] sm:%s1819_s9]  ;;  %s1588_s9 = smov 28  }
  0x35   : > { %v622_v58 = vrot.slane %v1850_v57, 1  ;;  %v657_v59 = vrot.slane %v1850_v57, 2  ;;  %v625_v60 = vrot.slane %v372_v54, 1  ;;  %v660_v61 = vrot.slane %v372_v54, 2 }
  0x37   : > { %v1858_v63 = vsel %vm405_vm0, %v623_v55, %v625_v60  ;;  %v1861_v2 = vsel %vm405_vm0, %v622_v58, %v623_v55  ;;  %v1864_v3 = vsel %vm461_vm1, %v658_v56, %v660_v61  ;;  %v1867_v4 = vsel %vm461_vm1, %v657_v59, %v658_v56 }
  0x38   : > { %491 = vrot.lane.b32.xlu1 %v1741_v12, %s1586_s13  ;;  %437 = vrot.lane.b32.xlu0 %v1744_v13, %s1583_s12 }
  0x3c   : > { %591 = vrot.lane.b32.xlu1 %v1708_v1, %s1587_s11  ;;  %567 = vrot.lane.b32.xlu0 %v471_v53, %s2295_s10 }
  0x40   : > { %593 = vrot.lane.b32.xlu1 %v1705_v0, %s1587_s11  ;;  %493 = vrot.lane.b32.xlu0 %v471_v53, %s1586_s13 }
  0x44   : > { %629 = vrot.lane.b32.xlu1 %v1744_v13, %s1588_s9  ;;  %627 = vrot.lane.b32.xlu0 %v1726_v8, %s1588_s9  ;;  %v418_v8 = vsel %vm405_vm0, %v416_v7, %v417_v9  ;;  %v473_v13 = vrot.slane %v1883_v6, 2 }
  0x46   : > { %v476_v22 = vsel %vm461_vm1, %v473_v13, %v475_v20 }
  0x48   : > { %664 = vrot.lane.b32.xlu1 %v471_v53, %s1589_s24  ;;  %662 = vrot.lane.b32.xlu0 %v1741_v12, %s1589_s24  ;;  %v472_v12 = vrot.slane %v1880_v5, 2 }
  0x4a   : > { %v474_v17 = vsel %vm461_vm1, %v472_v12, %v473_v13 }
  0x4c   : > { %521 = vrot.lane.b32.xlu1 %v1880_v5, %s2296_s27  ;;  %595 = vrot.lane.b32.xlu0 %v1880_v5, %s1587_s11 }
  0x50   : > { %631 = vrot.lane.b32.xlu1 %v418_v8, %s1588_s9  ;;  %597 = vrot.lane.b32.xlu0 %v1883_v6, %s1587_s11 }
  0x54   : > { %545 = vrot.lane.b32.xlu1 %v418_v8, %s2297_s5  ;;  %523 = vrot.lane.b32.xlu0 %v1883_v6, %s2296_s27 }
  0x58   : > { %666 = vrot.lane.b32.xlu1 %v474_v17, %s1589_s24  ;;  %633 = vrot.lane.b32.xlu0 %v420_v18, %s1588_s9 }
  0x5c   : > { %547 = vrot.lane.b32.xlu1 %v420_v18, %s2297_s5  ;;  %439 = vrot.lane.b32.xlu0 %v418_v8, %s1583_s12 }
  0x60   : > { %668 = vrot.lane.b32.xlu1 %v476_v22, %s1589_s24  ;;  %569 = vrot.lane.b32.xlu0 %v474_v17, %s2295_s10 }
  0x64   : > { %495 = vrot.lane.b32.xlu1 %v474_v17, %s1586_s13  ;;  %441 = vrot.lane.b32.xlu0 %v420_v18, %s1583_s12 }
  0x68   : > { %497 = vrot.lane.b32.xlu1 %v476_v22, %s1586_s13  ;;  %571 = vrot.lane.b32.xlu0 %v476_v22, %s2295_s10 }
  0x6c   : > { %525 = vrot.lane.b32.xlu1 %v1916_v23, %s2296_s27  ;;  %599 = vrot.lane.b32.xlu0 %v1916_v23, %s1587_s11 }
  0x70   : > { %635 = vrot.lane.b32.xlu1 %v423_v28, %s1588_s9  ;;  %601 = vrot.lane.b32.xlu0 %v1729_v10, %s1587_s11 }
  0x74   : > { %549 = vrot.lane.b32.xlu1 %v423_v28, %s2297_s5  ;;  %527 = vrot.lane.b32.xlu0 %v1729_v10, %s2296_s27 }
  0x78   : > { %670 = vrot.lane.b32.xlu1 %v479_v31, %s1589_s24  ;;  %637 = vrot.lane.b32.xlu0 %v1771_v25, %s1588_s9 }
  0x7c   : > { %551 = vrot.lane.b32.xlu1 %v1771_v25, %s2297_s5  ;;  %443 = vrot.lane.b32.xlu0 %v423_v28, %s1583_s12 }
  0x80   : > { %672 = vrot.lane.b32.xlu1 %v1776_v26, %s1589_s24  ;;  %573 = vrot.lane.b32.xlu0 %v479_v31, %s2295_s10 }
  0x84   : > { %499 = vrot.lane.b32.xlu1 %v479_v31, %s1586_s13  ;;  %445 = vrot.lane.b32.xlu0 %v1771_v25, %s1583_s12  ;;  %v428_v25 = vsel %vm405_vm0, %v426_v16, %v427_v29  ;;  %v484_v29 = vsel %vm461_vm1, %v482_v32, %v483_v35 }
  0x88   : > { %501 = vrot.lane.b32.xlu1 %v1776_v26, %s1586_s13  ;;  %575 = vrot.lane.b32.xlu0 %v1776_v26, %s2295_s10 }
  0x8c   : > { %529 = vrot.lane.b32.xlu1 %v1951_v15, %s2296_s27  ;;  %603 = vrot.lane.b32.xlu0 %v1951_v15, %s1587_s11 }
  0x90   : > { %639 = vrot.lane.b32.xlu1 %v428_v25, %s1588_s9  ;;  %605 = vrot.lane.b32.xlu0 %v1757_v19, %s1587_s11 }
  0x94   : > { %553 = vrot.lane.b32.xlu1 %v428_v25, %s2297_s5  ;;  %531 = vrot.lane.b32.xlu0 %v1757_v19, %s2296_s27 }
  0x96   : > { %v1972_v26 = vpop.permute.xlu1 %519  ;;  %v1974_v33 = vpop.permute.xlu0 %517 }
  0x98   : > { %674 = vrot.lane.b32.xlu1 %v484_v29, %s1589_s24  ;;  %641 = vrot.lane.b32.xlu0 %v1797_v36, %s1588_s9 }
  0x9a   : > { %v436_v34 = vpop.permute.xlu1 %435  ;;  %v1982_v37 = vpop.permute.xlu0 %541 }
  0x9c   : > { %555 = vrot.lane.b32.xlu1 %v1797_v36, %s2297_s5  ;;  %447 = vrot.lane.b32.xlu0 %v428_v25, %s1583_s12 }
  0x9e   : > { %v1987_v38 = vpop.permute.xlu1 %565  ;;  %v1989_v39 = vpop.permute.xlu0 %543 }
  0xa0   : > { %676 = vrot.lane.b32.xlu1 %v1808_v40, %s1589_s24  ;;  %577 = vrot.lane.b32.xlu0 %v484_v29, %s2295_s10 }
  0xa2   : > { %v488_v35 = vpop.permute.xlu1 %487  ;;  %v432_v41 = vpop.permute.xlu0 %431 }
  0xa3   : > { %v693_v46 = vsel %vm692_vm5, %v1764_v21, %v432_v41 }
  0xa4   : > { %503 = vrot.lane.b32.xlu1 %v484_v29, %s1586_s13  ;;  %449 = vrot.lane.b32.xlu0 %v1797_v36, %s1583_s12  ;;  %s1276_s12 = sshll.u32 %s305_s30, 1 }
  0xa5   : > { %s307_s23 = scalar_lea.vmem [#allocation2], %s1276_s12 }
  0xa6   : > { %v490_v42 = vpop.permute.xlu1 %489  ;;  %v434_v43 = vpop.permute.xlu0 %433  ;;  %s1142_s8 = sshll.u32 %s307_s23, 4  ;;  %s2223_s8 = int_to_ptr.vmem [resolvable:$true] %s1142_s8 }
  0xa7   : > { %v694_v36 = vsel %vm692_vm5, %v1780_v27, %v434_v43 }
  0xa8   : > { %505 = vrot.lane.b32.xlu1 %v1808_v40, %s1586_s13  ;;  %579 = vrot.lane.b32.xlu0 %v1808_v40, %s2295_s10  ;;  %v704_v40 = vsel %vm703_vm6, %v693_v46, %v488_v35  ;;  %v705_v21 = vsel %vm703_vm6, %v694_v36, %v490_v42  ;;  %s1310_s13 = sshll.u32 %s1568_s19, 1  ;;  %s1486_s19 = scalar_lea.vmem %s2223_s8, 32 }
  0xa9   : > { %v715_v49 = vsel %vm714_vm7, %v704_v40, %v1974_v33  ;;  %v716_v27 = vsel %vm714_vm7, %v705_v21, %v1972_v26  ;;  %s1138_s6 = sadd.s32 %s1564_s18, %s1310_s13  ;;  %s1127_s18 = scalar_lea.sflag [#allocation3], %s305_s30 }
  0xaa   : > { %v492_v44 = vpop.permute.xlu1 %491  ;;  %v438_v45 = vpop.permute.xlu0 %437  ;;  %v733_v55 = vsel %vm731_vm8, %v716_v27, %v1989_v39  ;;  %s1311_s14 = sshll.u32 %s1138_s6, 5  ;;  %p1487_p6 = scmp.ne.s32.totalorder %s2223_s8, %s1486_s19 }
  0xab   : > { %v696_v17 = vsel %vm692_vm5, %v1705_v0, %v438_v45  ;;  %s1590_s10 = smov [#allocation2]  }
  0xac   : > { %609 = vrot.lane.b32.xlu1 %v1838_v52, %s1587_s11  ;;  %607 = vrot.lane.b32.xlu0 %v1850_v57, %s1587_s11  ;;  %v732_v52 = vsel %vm731_vm8, %v715_v49, %v1982_v37  ;;  %s2221_s11 = scalar_lea.hbm %s2279_s4, %s1311_s14  ;;  %p1488_p7 = pnand %p1487_p6, %p1667_p3 }
  0xad   : > { %v749_v56 = vsel %vm748_vm9, %v732_v52, %v1987_v38 }
  0xae   : > { %v592_v47 = vpop.permute.xlu1 %591  ;;  %v568_v48 = vpop.permute.xlu0 %567  ;;  %p1489_p9 = pneg %p1488_p7 }
  0xaf   : > { %v750_v57 = vsel %vm748_vm9, %v733_v55, %v568_v48  ;;  %v766_v58 = vsel %vm765_vm10, %v749_v56, %v592_v47 }
  0xb0   : > { %645 = vrot.lane.b32.xlu1 %v1858_v63, %s1588_s9  ;;  %643 = vrot.lane.b32.xlu0 %v1861_v2, %s1588_s9  ;;  %s1490_s9 = sshll.u32 %s1590_s10, 4  ;;  %s1491_s9 = int_to_ptr.vmem [resolvable:$false] %s1490_s9 }
  0xb1   : > { %p1493_p10 = scmp.lt.s32.totalorder %s2223_s8, %s1491_s9 }
  0xb2   : > { %v594_v50 = vpop.permute.xlu1 %593  ;;  %v494_v51 = vpop.permute.xlu0 %493 }
  0xb3   : > { %v767_v59 = vsel %vm765_vm10, %v750_v57, %v594_v50  ;;  %v707_v22 = vsel %vm703_vm6, %v696_v17, %v494_v51 }
  0xb4   : > { %680 = vrot.lane.b32.xlu1 %v1864_v3, %s1589_s24  ;;  %678 = vrot.lane.b32.xlu0 %v1867_v4, %s1589_s24  ;;  %v695_v4 = vsel %vm692_vm5, %v1708_v1, %v436_v34  ;;  %v718_v28 = vsel %vm714_vm7, %v707_v22, %v1972_v26  ;;  %s1492_s24 = scalar_lea.vmem %s1491_s9, 64 }
  0xb5   : > { %v706_v8 = vsel %vm703_vm6, %v695_v4, %v492_v44  ;;  %v735_v0 = vsel %vm731_vm8, %v718_v28, %v1989_v39  ;;  %p1494_p11 = scmp.lt.s32.totalorder %s1492_s24, %s1486_s19 }
  0xb6   : > { %v630_v53 = vpop.permute.xlu1 %629  ;;  %v628_v54 = vpop.permute.xlu0 %627  ;;  %v717_v11 = vsel %vm714_vm7, %v706_v8, %v1974_v33  ;;  %v752_v29 = vsel %vm748_vm9, %v735_v0, %v568_v48 }
  0xb7   : > { %v784_v60 = vsel %vm782_vm11, %v767_v59, %v630_v53  ;;  %v783_v61 = vsel %vm782_vm11, %v766_v58, %v628_v54  ;;  %v734_v14 = vsel %vm731_vm8, %v717_v11, %v1982_v37  ;;  %p1495_p12 = por %p1494_p11, %p1493_p10 }
  0xb8   : > { %v751_v1 = vsel %vm748_vm9, %v734_v14, %v1987_v38 }
  0xb9   : > { %p1496_p13 = pnand %p1495_p12, %p1489_p9 }
  0xba   : > { %v665_v62 = vpop.permute.xlu1 %664  ;;  %v663_v63 = vpop.permute.xlu0 %662 }
  0xbb   : > { %v801_v2 = vsel %vm799_vm12, %v784_v60, %v665_v62  ;;  %v800_v3 = vsel %vm799_vm12, %v783_v61, %v663_v63 }
  0xbc   : > { %1353 = vmatprep.mubr.msk.f32.mxu0 %vm816_vm13, %v800_v3 }
  0xbd   : > { %1354 = vmatmul.mubr.msk.f32.vlgmr.msra.gmra.mrb[0].mxu0 %vm816_vm13, %v801_v2 }
  0xbe   : > { %v522_v7 = vpop.permute.xlu1 %521  ;;  %v596_v9 = vpop.permute.xlu0 %595 }
  0xbf   : > { %v768_v24 = vsel %vm765_vm10, %v751_v1, %v596_v9  ;;  %v719_v34 = vsel %vm714_vm7, %v706_v8, %v522_v7 }
  0xc2   : > { %v632_v12 = vpop.permute.xlu1 %631  ;;  %v598_v13 = vpop.permute.xlu0 %597 }
  0xc3   : > { %v785_v30 = vsel %vm782_vm11, %v768_v24, %v632_v12  ;;  %v769_v37 = vsel %vm765_vm10, %v752_v29, %v598_v13 }
  0xc6   : > { %v546_v18 = vpop.permute.xlu1 %545  ;;  %v524_v20 = vpop.permute.xlu0 %523 }
  0xc7   : > { %v736_v26 = vsel %vm731_vm8, %v719_v34, %v546_v18  ;;  %v720_v47 = vsel %vm714_vm7, %v707_v22, %v524_v20 }
  0xca   : > { %v667_v31 = vpop.permute.xlu1 %666  ;;  %v634_v16 = vpop.permute.xlu0 %633 }
  0xcb   : > { %v802_v25 = vsel %vm799_vm12, %v785_v30, %v667_v31  ;;  %v786_v38 = vsel %vm782_vm11, %v769_v37, %v634_v16 }
  0xcc   : > { %1356 = vmatprep.mubr.msk.f32.mxu0 %vm816_vm13, %v802_v25 }
  0xce   : > { %v548_v32 = vpop.permute.xlu1 %547  ;;  %v440_v33 = vpop.permute.xlu0 %439 }
  0xcf   : > { %v737_v48 = vsel %vm731_vm8, %v720_v47, %v548_v32  ;;  %v697_v27 = vsel %vm692_vm5, %v1880_v5, %v440_v33 }
  0xd2   : > { %v669_v35 = vpop.permute.xlu1 %668  ;;  %v570_v41 = vpop.permute.xlu0 %569 }
  0xd3   : > { %v803_v42 = vsel %vm799_vm12, %v786_v38, %v669_v35  ;;  %v753_v43 = vsel %vm748_vm9, %v736_v26, %v570_v41 }
  0xd4   : > { %v770_v39 = vsel %vm765_vm10, %v753_v43, %v596_v9  ;;  %1357 = vmatmul.mubr.msk.f32.gmra.mrb[2].mxu0 %vm816_vm13, %v803_v42 }
  0xd5   : > { %v787_v44 = vsel %vm782_vm11, %v770_v39, %v632_v12 }
  0xd6   : > { %v496_v45 = vpop.permute.xlu1 %495  ;;  %v442_v46 = vpop.permute.xlu0 %441  ;;  %v804_v36 = vsel %vm799_vm12, %v787_v44, %v667_v31 }
  0xd7   : > { %1359 = vmatprep.mubr.msk.f32.mxu0 %vm816_vm13, %v804_v36  ;;  %v708_v55 = vsel %vm703_vm6, %v697_v27, %v496_v45  ;;  %v698_v60 = vsel %vm692_vm5, %v1883_v6, %v442_v46 }
  0xd8   : > { %v721_v56 = vsel %vm714_vm7, %v708_v55, %v522_v7 }
  0xd9   : > { %v738_v59 = vsel %vm731_vm8, %v721_v56, %v546_v18 }
  0xda   : > { %v498_v40 = vpop.permute.xlu1 %497  ;;  %v572_v21 = vpop.permute.xlu0 %571  ;;  %v755_v63 = vsel %vm748_vm9, %v738_v59, %v570_v41 }
  0xdb   : > { %v754_v49 = vsel %vm748_vm9, %v737_v48, %v572_v21  ;;  %v709_v5 = vsel %vm703_vm6, %v698_v60, %v498_v40 }
  0xdc   : > { %v771_v50 = vsel %vm765_vm10, %v754_v49, %v598_v13  ;;  %v722_v3 = vsel %vm714_vm7, %v709_v5, %v524_v20 }
  0xdd   : > { %v788_v51 = vsel %vm782_vm11, %v771_v50, %v634_v16  ;;  %v739_v6 = vsel %vm731_vm8, %v722_v3, %v548_v32 }
  0xde   : > { %v526_v52 = vpop.permute.xlu1 %525  ;;  %v600_v53 = vpop.permute.xlu0 %599  ;;  %v805_v54 = vsel %vm799_vm12, %v788_v51, %v669_v35  ;;  %v756_v13 = vsel %vm748_vm9, %v739_v6, %v572_v21 }
  0xdf   : > { %1360 = vmatmul.mubr.msk.f32.gmra.mrb[4].mxu0 %vm816_vm13, %v805_v54  ;;  %v772_v2 = vsel %vm765_vm10, %v755_v63, %v600_v53  ;;  %v723_v14 = vsel %vm714_vm7, %v708_v55, %v526_v52 }
  0xe2   : > { %v636_v57 = vpop.permute.xlu1 %635  ;;  %v602_v58 = vpop.permute.xlu0 %601 }
  0xe3   : > { %v789_v4 = vsel %vm782_vm11, %v772_v2, %v636_v57  ;;  %v773_v17 = vsel %vm765_vm10, %v756_v13, %v602_v58 }
  0xe6   : > { %v550_v61 = vpop.permute.xlu1 %549  ;;  %v528_v62 = vpop.permute.xlu0 %527 }
  0xe7   : > { %v740_v18 = vsel %vm731_vm8, %v723_v14, %v550_v61  ;;  %v724_v32 = vsel %vm714_vm7, %v709_v5, %v528_v62 }
  0xea   : > { %v671_v7 = vpop.permute.xlu1 %670  ;;  %v638_v9 = vpop.permute.xlu0 %637 }
  0xeb   : > { %v806_v8 = vsel %vm799_vm12, %v789_v4, %v671_v7  ;;  %v790_v20 = vsel %vm782_vm11, %v773_v17, %v638_v9 }
  0xec   : > { %1362 = vmatprep.mubr.msk.f32.mxu0 %vm816_vm13, %v806_v8 }
  0xee   : > { %v552_v11 = vpop.permute.xlu1 %551  ;;  %v444_v12 = vpop.permute.xlu0 %443 }
  0xef   : > { %v741_v33 = vsel %vm731_vm8, %v724_v32, %v552_v11  ;;  %v699_v35 = vsel %vm692_vm5, %v1916_v23, %v444_v12 }
  0xf2   : > { %v673_v22 = vpop.permute.xlu1 %672  ;;  %v574_v1 = vpop.permute.xlu0 %573 }
  0xf3   : > { %v807_v24 = vsel %vm799_vm12, %v790_v20, %v673_v22  ;;  %v757_v28 = vsel %vm748_vm9, %v740_v18, %v574_v1 }
  0xf4   : > { %v774_v30 = vsel %vm765_vm10, %v757_v28, %v600_v53  ;;  %1363 = vmatmul.mubr.msk.f32.gmra.mrb[6].mxu0 %vm816_vm13, %v807_v24 }
  0xf5   : > { %v791_v31 = vsel %vm782_vm11, %v774_v30, %v636_v57 }
  0xf6   : > { %v500_v16 = vpop.permute.xlu1 %499  ;;  %v446_v25 = vpop.permute.xlu0 %445  ;;  %v808_v0 = vsel %vm799_vm12, %v791_v31, %v671_v7 }
  0xf7   : > { %1365 = vmatprep.mubr.msk.f32.mxu1 %vm816_vm13, %v808_v0  ;;  %v710_v39 = vsel %vm703_vm6, %v699_v35, %v500_v16  ;;  %v700_v47 = vsel %vm692_vm5, %v1729_v10, %v446_v25 }
  0xf8   : > { %v725_v44 = vsel %vm714_vm7, %v710_v39, %v526_v52 }
  0xf9   : > { %v742_v36 = vsel %vm731_vm8, %v725_v44, %v550_v61 }
  0xfa   : > { %v502_v29 = vpop.permute.xlu1 %501  ;;  %v576_v34 = vpop.permute.xlu0 %575  ;;  %v759_v21 = vsel %vm748_vm9, %v742_v36, %v574_v1 }
  0xfb   : > { %v758_v37 = vsel %vm748_vm9, %v741_v33, %v576_v34  ;;  %v711_v23 = vsel %vm703_vm6, %v700_v47, %v502_v29 }
  0xfc   : > { %v775_v26 = vsel %vm765_vm10, %v758_v37, %v602_v58  ;;  %v726_v50 = vsel %vm714_vm7, %v711_v23, %v528_v62 }
  0xfd   : > { %v792_v38 = vsel %vm782_vm11, %v775_v26, %v638_v9  ;;  %v743_v10 = vsel %vm731_vm8, %v726_v50, %v552_v11 }
  0xfe   : > { %v530_v41 = vpop.permute.xlu1 %529  ;;  %v604_v42 = vpop.permute.xlu0 %603  ;;  %v809_v43 = vsel %vm799_vm12, %v792_v38, %v673_v22  ;;  %v760_v56 = vsel %vm748_vm9, %v743_v10, %v576_v34 }
  0xff   : > { %1366 = vmatmul.mubr.msk.f32.vlgmr.msra.gmra.mrb[0].mxu1 %vm816_vm13, %v809_v43  ;;  %v776_v49 = vsel %vm765_vm10, %v759_v21, %v604_v42  ;;  %v727_v57 = vsel %vm714_vm7, %v710_v39, %v530_v41 }
 0x102   : > { %v640_v45 = vpop.permute.xlu1 %639  ;;  %v606_v46 = vpop.permute.xlu0 %605 }
 0x103   : > { %v793_v51 = vsel %vm782_vm11, %v776_v49, %v640_v45  ;;  %v777_v58 = vsel %vm765_vm10, %v760_v56, %v606_v46 }
 0x106   : > { %v554_v48 = vpop.permute.xlu1 %553  ;;  %v532_v40 = vpop.permute.xlu0 %531 }
 0x107   : > { %v744_v59 = vsel %vm731_vm8, %v727_v57, %v554_v48  ;;  %v728_v8 = vsel %vm714_vm7, %v711_v23, %v532_v40 }
 0x10a   : > { %v675_v27 = vpop.permute.xlu1 %674  ;;  %v642_v52 = vpop.permute.xlu0 %641 }
 0x10b   : > { %v810_v53 = vsel %vm799_vm12, %v793_v51, %v675_v27  ;;  %v794_v60 = vsel %vm782_vm11, %v777_v58, %v642_v52 }
 0x10c   : > { %1368 = vmatprep.mubr.msk.f32.mxu1 %vm816_vm13, %v810_v53 }
 0x10e   : > { %v556_v54 = vpop.permute.xlu1 %555  ;;  %v448_v55 = vpop.permute.xlu0 %447 }
 0x10f   : > { %v745_v6 = vsel %vm731_vm8, %v728_v8, %v556_v54  ;;  %v701_v11 = vsel %vm692_vm5, %v1951_v15, %v448_v55 }
 0x112   : > { %v677_v61 = vpop.permute.xlu1 %676  ;;  %v578_v62 = vpop.permute.xlu0 %577 }
 0x113   : > { %v811_v5 = vsel %vm799_vm12, %v794_v60, %v677_v61  ;;  %v761_v63 = vsel %vm748_vm9, %v744_v59, %v578_v62 }
 0x114   : > { %v778_v2 = vsel %vm765_vm10, %v761_v63, %v604_v42  ;;  %1369 = vmatmul.mubr.msk.f32.gmra.mrb[2].mxu1 %vm816_vm13, %v811_v5 }
 0x115   : > { %v795_v3 = vsel %vm782_vm11, %v778_v2, %v640_v45 }
 0x116   : > { %v504_v4 = vpop.permute.xlu1 %503  ;;  %v450_v7 = vpop.permute.xlu0 %449  ;;  %v812_v9 = vsel %vm799_vm12, %v795_v3, %v675_v27 }
 0x117   : > { %1371 = vmatprep.mubr.msk.f32.mxu1 %vm816_vm13, %v812_v9  ;;  %v702_v12 = vsel %vm692_vm5, %v1757_v19, %v450_v7  ;;  %v712_v17 = vsel %vm703_vm6, %v701_v11, %v504_v4 }
 0x118   : > { %v729_v28 = vsel %vm714_vm7, %v712_v17, %v530_v41 }
 0x119   : > { %v746_v16 = vsel %vm731_vm8, %v729_v28, %v554_v48 }
 0x11a   : > { %v506_v13 = vpop.permute.xlu1 %505  ;;  %v580_v14 = vpop.permute.xlu0 %579  ;;  %v763_v33 = vsel %vm748_vm9, %v746_v16, %v578_v62 }
 0x11b   : > { %v713_v18 = vsel %vm703_vm6, %v702_v12, %v506_v13  ;;  %v762_v20 = vsel %vm748_vm9, %v745_v6, %v580_v14 }
 0x11c   : > { %v730_v22 = vsel %vm714_vm7, %v713_v18, %v532_v40  ;;  %v779_v1 = vsel %vm765_vm10, %v762_v20, %v606_v46 }
 0x11d   : > { %v796_v24 = vsel %vm782_vm11, %v779_v1, %v642_v52  ;;  %v747_v31 = vsel %vm731_vm8, %v730_v22, %v556_v54 }
 0x11e   : > { %v610_v15 = vpop.permute.xlu1 %609  ;;  %v608_v30 = vpop.permute.xlu0 %607  ;;  %v813_v19 = vsel %vm799_vm12, %v796_v24, %v677_v61  ;;  %v764_v25 = vsel %vm748_vm9, %v747_v31, %v580_v14 }
 0x11f   : > { %1372 = vmatmul.mubr.msk.f32.gmra.mrb[4].mxu1 %vm816_vm13, %v813_v19  ;;  %v781_v29 = vsel %vm765_vm10, %v764_v25, %v610_v15  ;;  %v780_v34 = vsel %vm765_vm10, %v763_v33, %v608_v30 }
 0x122   : > { %v646_v0 = vpop.permute.xlu1 %645  ;;  %v644_v32 = vpop.permute.xlu0 %643 }
 0x123   : > { %v798_v37 = vsel %vm782_vm11, %v781_v29, %v646_v0  ;;  %v797_v26 = vsel %vm782_vm11, %v780_v34, %v644_v32 }
 0x126   : > { %v681_v38 = vpop.permute.xlu1 %680  ;;  %v679_v35 = vpop.permute.xlu0 %678 }
 0x127   : > { %v815_v41 = vsel %vm799_vm12, %v798_v37, %v681_v38  ;;  %v814_v42 = vsel %vm799_vm12, %v797_v26, %v679_v35 }
 0x128   : > { %1374 = vmatprep.mubr.msk.f32.mxu1 %vm816_vm13, %v814_v42 }
 0x129   : > { %1375 = vmatmul.mubr.msk.f32.gmra.mrb[6].mxu1 %vm816_vm13, %v815_v41 }
 0x190   : > { %v1355_v43 = vpop.f32.mrb[0].mxu0 }
 0x191   : > { %v1015_v39 = vsel %vm703_vm6, %v1355_v43, 0.0  ;;  %v935_v44 = vpop.f32.mrb[1].mxu0 }
 0x192   : > { %v1014_v45 = vsel %vm703_vm6, %v935_v44, 0.0 }
 0x193   : > { %v1016_v46 = vadd.f32 %v1015_v39, %v1014_v45 }
 0x1a7   : > { %v1358_v36 = vpop.f32.mrb[2].mxu0 }
 0x1a8   : > { %v945_v47 = vpop.f32.mrb[3].mxu0  ;;  %v1019_v23 = vsel %vm703_vm6, %v1358_v36, 0.0 }
 0x1a9   : > { %v1017_v48 = vsel %vm703_vm6, %v945_v47, 0.0 }
 0x1aa   : > { %v1018_v40 = vadd.f32 %v1017_v48, %v1016_v46 }
 0x1ac   : > { %v1020_v21 = vadd.f32 %v1019_v23, %v1018_v40 }
 0x1b2   : > { %v1361_v49 = vpop.f32.mrb[4].mxu0 }
 0x1b3   : > { %v955_v50 = vpop.f32.mrb[5].mxu0  ;;  %v1023_v52 = vsel %vm703_vm6, %v1361_v49, 0.0 }
 0x1b4   : > { %v1021_v51 = vsel %vm703_vm6, %v955_v50, 0.0 }
 0x1b5   : > { %v1022_v27 = vadd.f32 %v1021_v51, %v1020_v21 }
 0x1b7   : > { %v1024_v53 = vadd.f32 %v1023_v52, %v1022_v27 }
 0x1c7   : > { %v1364_v10 = vpop.f32.mrb[6].mxu0 }
 0x1c8   : > { %v965_v54 = vpop.f32.mrb[7].mxu0  ;;  %v1027_v57 = vsel %vm703_vm6, %v1364_v10, 0.0 }
 0x1c9   : > { %v1025_v55 = vsel %vm703_vm6, %v965_v54, 0.0 }
 0x1ca   : > { %v1026_v56 = vadd.f32 %v1025_v55, %v1024_v53 }
 0x1cc   : > { %v1028_v58 = vadd.f32 %v1027_v57, %v1026_v56 }
 0x1d2   : > { %v1367_v59 = vpop.f32.mrb[0].mxu1 }
 0x1d3   : > { %v975_v60 = vpop.f32.mrb[1].mxu1  ;;  %v1031_v5 = vsel %vm703_vm6, %v1367_v59, 0.0 }
 0x1d4   : > { %v1029_v61 = vsel %vm703_vm6, %v975_v60, 0.0 }
 0x1d5   : > { %v1030_v62 = vadd.f32 %v1029_v61, %v1028_v58 }
 0x1d7   : > { %v1032_v63 = vadd.f32 %v1031_v5, %v1030_v62 }
 0x1e7   : > { %v1370_v2 = vpop.f32.mrb[2].mxu1 }
 0x1e8   : > { %v985_v3 = vpop.f32.mrb[3].mxu1  ;;  %v1035_v9 = vsel %vm703_vm6, %v1370_v2, 0.0 }
 0x1e9   : > { %v1033_v4 = vsel %vm703_vm6, %v985_v3, 0.0 }
 0x1ea   : > { %v1034_v7 = vadd.f32 %v1033_v4, %v1032_v63 }
 0x1ec   : > { %v1036_v8 = vadd.f32 %v1035_v9, %v1034_v7 }
 0x1f2   : > { %v1373_v6 = vpop.f32.mrb[4].mxu1 }
 0x1f3   : > { %v995_v11 = vpop.f32.mrb[5].mxu1  ;;  %v1039_v14 = vsel %vm703_vm6, %v1373_v6, 0.0 }
 0x1f4   : > { %v1037_v12 = vsel %vm703_vm6, %v995_v11, 0.0 }
 0x1f5   : > { %v1038_v13 = vadd.f32 %v1037_v12, %v1036_v8 }
 0x1f7   : > { %v1040_v17 = vadd.f32 %v1039_v14, %v1038_v13 }
 0x1fc   : > { %v1376_v18 = vpop.f32.mrb[6].mxu1 }
 0x1fd   : > { %v1005_v20 = vpop.f32.mrb[7].mxu1  ;;  %v1043_v24 = vsel %vm703_vm6, %v1376_v18, 0.0 }
 0x1fe   : > { %v1041_v22 = vsel %vm703_vm6, %v1005_v20, 0.0 }
 0x1ff   : > { %v1042_v1 = vadd.f32 %v1041_v22, %v1040_v17 }
 0x201   : > { %v1044_v28 = vadd.f32 %v1043_v24, %v1042_v1 }
 0x203   : > { %v1045_v15 = vrot.slane %v1044_v28, 4 }
 0x205   : > { %v1046_v30 = vadd.f32 %v1045_v15, %v1044_v28 }
 0x207   : > { %v1047_v19 = vrot.slane %v1046_v30, 2 }
 0x209   : > { %v1048_v31 = vadd.f32 %v1047_v19, %v1046_v30 }
 0x20b   : > { %v1049_v16 = vrot.slane %v1048_v31, 1 }
 0x20d   : > { %v1050_v25 = vadd.f32 %v1049_v16, %v1048_v31 }
 0x20f   : > { %v2181_v0 = vmul.f32 0.0078125, %v1050_v25 }
 0x211   : > { %v1053_v32 = vsub.f32 %v935_v44, %v2181_v0  ;;  %v1054_v33 = vsub.f32 %v1355_v43, %v2181_v0  ;;  %v1055_v29 = vsub.f32 %v945_v47, %v2181_v0  ;;  %v1056_v34 = vsub.f32 %v1358_v36, %v2181_v0 }
 0x212   : > { %v1057_v37 = vsub.f32 %v955_v50, %v2181_v0  ;;  %v1058_v26 = vsub.f32 %v1361_v49, %v2181_v0  ;;  %v1059_v38 = vsub.f32 %v965_v54, %v2181_v0  ;;  %v1060_v35 = vsub.f32 %v1364_v10, %v2181_v0 }
 0x213   : > { %v1061_v41 = vsub.f32 %v975_v60, %v2181_v0  ;;  %v1062_v42 = vsub.f32 %v1367_v59, %v2181_v0  ;;  %v1063_v39 = vsub.f32 %v985_v3, %v2181_v0  ;;  %v1064_v43 = vsub.f32 %v1370_v2, %v2181_v0 }
 0x214   : > { %v1065_v44 = vsub.f32 %v995_v11, %v2181_v0  ;;  %v1066_v45 = vsub.f32 %v1373_v6, %v2181_v0  ;;  %v1067_v46 = vsub.f32 %v1005_v20, %v2181_v0  ;;  %v1068_v36 = vsub.f32 %v1376_v18, %v2181_v0 }
 0x215   : > { %v1069_v47 = vmul.f32 %v1053_v32, %v1053_v32  ;;  %v1070_v48 = vmul.f32 %v1054_v33, %v1054_v33  ;;  %v1071_v40 = vmul.f32 %v1055_v29, %v1055_v29  ;;  %v1072_v23 = vmul.f32 %v1056_v34, %v1056_v34 }
 0x216   : > { %v1073_v51 = vmul.f32 %v1057_v37, %v1057_v37  ;;  %v1074_v53 = vmul.f32 %v1058_v26, %v1058_v26  ;;  %v1075_v55 = vmul.f32 %v1059_v38, %v1059_v38  ;;  %v1076_v58 = vmul.f32 %v1060_v35, %v1060_v35 }
 0x217   : > { %v1085_v21 = vsel %vm703_vm6, %v1069_v47, 0.0  ;;  %v1086_v49 = vsel %vm703_vm6, %v1070_v48, 0.0  ;;  %v1088_v27 = vsel %vm703_vm6, %v1071_v40, 0.0  ;;  %v1090_v10 = vsel %vm703_vm6, %v1072_v23, 0.0 }
 0x218   : > { %v1087_v50 = vadd.f32 %v1086_v49, %v1085_v21  ;;  %v1092_v56 = vsel %vm703_vm6, %v1073_v51, 0.0  ;;  %v1094_v59 = vsel %vm703_vm6, %v1074_v53, 0.0  ;;  %v1077_v61 = vmul.f32 %v1061_v41, %v1061_v41 }
 0x219   : > { %v1096_v62 = vsel %vm703_vm6, %v1075_v55, 0.0  ;;  %v1078_v63 = vmul.f32 %v1062_v42, %v1062_v42  ;;  %v1098_v2 = vsel %vm703_vm6, %v1076_v58, 0.0  ;;  %v1079_v4 = vmul.f32 %v1063_v39, %v1063_v39 }
 0x21a   : > { %v1089_v52 = vadd.f32 %v1088_v27, %v1087_v50  ;;  %v1100_v7 = vsel %vm703_vm6, %v1077_v61, 0.0  ;;  %v1080_v8 = vmul.f32 %v1064_v43, %v1064_v43  ;;  %v1081_v12 = vmul.f32 %v1065_v44, %v1065_v44 }
 0x21b   : > { %v1102_v6 = vsel %vm703_vm6, %v1078_v63, 0.0  ;;  %v1104_v13 = vsel %vm703_vm6, %v1079_v4, 0.0  ;;  %v1082_v17 = vmul.f32 %v1066_v45, %v1066_v45  ;;  %v1083_v22 = vmul.f32 %v1067_v46, %v1067_v46 }
 0x21c   : > { %v1091_v54 = vadd.f32 %v1090_v10, %v1089_v52  ;;  %v1106_v18 = vsel %vm703_vm6, %v1080_v8, 0.0  ;;  %v1108_v1 = vsel %vm703_vm6, %v1081_v12, 0.0  ;;  %v1084_v28 = vmul.f32 %v1068_v36, %v1068_v36 }
 0x21d   : > { %v1110_v15 = vsel %vm703_vm6, %v1082_v17, 0.0  ;;  %v1112_v19 = vsel %vm703_vm6, %v1083_v22, 0.0 }
 0x21e   : > { %v1093_v57 = vadd.f32 %v1092_v56, %v1091_v54  ;;  %v1114_v16 = vsel %vm703_vm6, %v1084_v28, 0.0 }
 0x220   : > { %v1095_v60 = vadd.f32 %v1094_v59, %v1093_v57 }
 0x222   : > { %v1097_v5 = vadd.f32 %v1096_v62, %v1095_v60 }
 0x224   : > { %v1099_v3 = vadd.f32 %v1098_v2, %v1097_v5 }
 0x226   : > { %v1101_v9 = vadd.f32 %v1100_v7, %v1099_v3 }
 0x228   : > { %v1103_v11 = vadd.f32 %v1102_v6, %v1101_v9 }
 0x22a   : > { %v1105_v14 = vadd.f32 %v1104_v13, %v1103_v11 }
 0x22c   : > { %v1107_v20 = vadd.f32 %v1106_v18, %v1105_v14 }
 0x22e   : > { %v1109_v24 = vadd.f32 %v1108_v1, %v1107_v20 }
 0x230   : > { %v1111_v30 = vadd.f32 %v1110_v15, %v1109_v24 }
 0x232   : > { %v1113_v31 = vadd.f32 %v1112_v19, %v1111_v30 }
 0x234   : > { %v1115_v25 = vadd.f32 %v1114_v16, %v1113_v31 }
 0x236   : > { %v1116_v32 = vrot.slane %v1115_v25, 4 }
 0x238   : > { %v1117_v33 = vadd.f32 %v1116_v32, %v1115_v25 }
 0x23a   : > { %v1118_v29 = vrot.slane %v1117_v33, 2 }
 0x23c   : > { %v1119_v34 = vadd.f32 %v1118_v29, %v1117_v33 }
 0x23e   : > { %v1120_v37 = vrot.slane %v1119_v34, 1 }
 0x240   : > { %v1121_v26 = vadd.f32 %v1120_v37, %v1119_v34 }
 0x242   : > { %v1123_v38 = vsel %vm1122_vm14, %v2181_v0, %v1121_v26 }
 0x243   : > { %1125 = vst.msk [vmem:[%s307_s23] sm:$0x3] %vm1124_vm15, %v1123_v38 }
 0x244   : > { %1499 = shalt.err (!%p1496_p13)
}
 0x245   : > { %s1500_s27 = scalar_lea.hbm %s2221_s11, 32  ;;  %s1504_s12 = scalar_lea.hbm %s2279_s4, 128 }
 0x246   : > { %p1501_p0 = scmp.ne.s32.totalorder %s2221_s11, %s1500_s27  ;;  %p1505_p4 = scmp.lt.u32.totalorder %s2221_s11, %s2279_s4 }
 0x247   : > { %p1506_p5 = scmp.lt.u32.totalorder %s1504_s12, %s1500_s27  ;;  %p1508_p7 = scmp.lt.u32.totalorder %s1500_s27, %s2221_s11 }
 0x248   : > { %p1502_p1 = pnand %p1501_p0, %p1667_p3 }
 0x249   : > { %p1507_p6 = por %p1506_p5, %p1505_p4 }
 0x24a   : > { %p1503_p2 = pneg %p1502_p1 }
 0x24b   : > { %p1509_p9 = por %p1508_p7, %p1507_p6 }
 0x24d   : > { %p1510_p10 = pnand %p1509_p9, %p1503_p2 }
 0x24f   : > { %1513 = shalt.err (!%p1510_p10)
}
 0x250   : > { %1395 = dma.vmem_to_hbm [thread:$0]  (%p1667_p3), %s2223_s8, 32, %s2221_s11, %s1127_s18  }
 0x251 PF: > { %p1401_p11 = scmp.ge.s32.totalorder %s1580_s22, 2  ;;  %s1154_s14 = sand.u32 1, %s1552_s15  }
 0x252   : > { %s1155_s23 = scalar_lea.sflag [#allocation3], %s1154_s14 }
 0x253   : > { %p1398_p12 = pnand %p1401_p11, %p1676_p8 }
 0x255   : > { %1547 = dma.done.wait (!%p1398_p12), %s1155_s23, 32  }
 0x256   : > { %1549 = vsyncadd (!%p1398_p12), %s1155_s23, 4294967264  ;;  %s17_s22 = sadd.s32 1, %s1580_s22   ;;  %s2298_s15 = smov %s1556_s16 }
 0x257   : > { %p14_p13 = scmp.ge.s32.totalorder %s17_s22, 6   ;;  %s2299_s16 = smov %s1560_s17 }
 0x258   : > { %s2300_s17 = smov %s1685_s7  ;;  %s2301_s18 = smov %s1572_s20 }
 0x259   : > { %s2302_s19 = smov %s1576_s21  ;;  %s2303_s20 = smov %s2306_s25 }
 0x25a   : > { %s2304_s21 = smov %s2310_s26  ;;  %16 = sbr.rel (!%p14_p13) target bundleno = 8 (0x8), region = 77 }
 0x261   :  { %1160 = vsyncpa [#allocation3], 1 }
 0x262   :  { %1162 = vsyncpa [#allocation3 + $0x1], 1 }

</bundles_post_ra>
